<compile_context>
chip_gen: v7x
topology: tpu7x:2x2x1
jax: 0.10.0
libtpu: 0.0.40
codegen_flags: <defaults>
</compile_context>

<pallas_src>
import functools

import jax
import jax.numpy as jnp
from jax.experimental import pallas as pl
from jax.experimental.pallas import tpu as pltpu

DA_LEN = 32
LANE = 128


def _da_kernel(ptr_ref, x_ref, queue_ref,
               out_probs_ref, out_queue_ref, out_ptr_ref,
               *, fuse_softmax: bool, valid_c: int, padded_c: int):
    ptr = ptr_ref[0]                      # int32 scalar (SMEM)
    x = x_ref[...]                        # (B, Cp) f32, VMEM
    queue = queue_ref[...]                # (DA_LEN, Cp) f32, VMEM

    if fuse_softmax:
        # Fused row softmax: max/sum on the XLU, exp on the EUP.  Padded lanes
        # arrive as a large negative => exp underflows to exactly 0.
        x = x - jnp.max(x, axis=1, keepdims=True)
        e = jnp.exp(x)
        probs = e * (1.0 / jnp.sum(e, axis=1, keepdims=True))
    else:
        probs = x

    # probs_bt_mean = probs.mean(0)
    mean_bt = jnp.mean(probs, axis=0, keepdims=True)            # (1, Cp)

    # Mean of the UPDATED queue without an iota/select scatter:
    #   new_sum = old_sum - old_row[ptr] + mean_bt
    old_row = queue_ref[pl.ds(ptr, 1), :]                       # (1, Cp) dynamic row
    q_mean = (jnp.sum(queue, axis=0, keepdims=True) - old_row + mean_bt) * (1.0 / DA_LEN)

    if padded_c != valid_c:
        # Padded lanes are identically zero in both probs and queue, which
        # would make q_mean zero there; keep the divide finite.  Real lanes
        # keep the module's exact divide-by-column-mean semantics.
        lane = jax.lax.broadcasted_iota(jnp.int32, q_mean.shape, dimension=1)
        q_mean = jnp.where(lane < valid_c, q_mean, 1.0)

    # Queue state update: copy-through, then overwrite only the dirty row.
    out_queue_ref[...] = queue
    out_queue_ref[pl.ds(ptr, 1), :] = mean_bt

    # probs = probs / queue.mean(0): C exact reciprocals + VALU broadcast mult
    # (instead of B*C divides).
    p = probs * (1.0 / q_mean)

    # probs = probs / probs.sum(dim=1, keepdim=True): exact, so rows sum to 1.
    out_probs_ref[...] = p * (1.0 / jnp.sum(p, axis=1, keepdims=True))

    # DA_ptr = (ptr + 1) % DA_len
    out_ptr_ref[0] = (ptr + 1) % DA_LEN


@functools.partial(jax.jit, static_argnames=("fuse_softmax", "valid_c"))
def _da_step(x, queue, ptr, *, fuse_softmax, valid_c):
    """One DA step.  x: (B, Cp) logits (fused) or probs; queue: (32, Cp); ptr: (1,) i32."""
    B, Cp = x.shape
    assert queue.shape == (DA_LEN, Cp)

    # Gridless single block: x in + probs out + queue in + queue out in VMEM.
    vmem_bytes = 4 * (2 * B * Cp + 2 * DA_LEN * Cp)
    assert vmem_bytes < 24 * 1024 * 1024, "single-block DA kernel would not fit VMEM"
    # TODO(synk): two-phase B-tiled grid ('arbitrary' accumulate + 'parallel'
    # normalize) for very large B*Cp (v7x has only 64 MiB VMEM).

    kernel = functools.partial(
        _da_kernel, fuse_softmax=fuse_softmax, valid_c=valid_c, padded_c=Cp)

    return pl.pallas_call(
        kernel,
        out_shape=(
            jax.ShapeDtypeStruct((B, Cp), jnp.float32),        # normalized probs
            jax.ShapeDtypeStruct((DA_LEN, Cp), jnp.float32),   # updated queue
            jax.ShapeDtypeStruct((1,), jnp.int32),             # updated ptr
        ),
        in_specs=[
            pl.BlockSpec(memory_space=pltpu.SMEM),             # ptr (scalar)
            pl.BlockSpec((B, Cp), lambda: (0, 0)),             # logits / probs
            pl.BlockSpec((DA_LEN, Cp), lambda: (0, 0)),        # queue
        ],
        out_specs=(
            pl.BlockSpec((B, Cp), lambda: (0, 0)),
            pl.BlockSpec((DA_LEN, Cp), lambda: (0, 0)),
            pl.BlockSpec(memory_space=pltpu.SMEM),
        ),
    )(ptr, x, queue)


class DAPallas:
    """Functional-state wrapper mirroring the PyTorch DA module.

    fuse_softmax=True: __call__ takes logits and applies softmax inside the
    kernel (saves one (B,C) HBM round trip + one dispatch).
    fuse_softmax=False: __call__ takes probabilities, exactly like the module.
    """

    def __init__(self, num_classes, fuse_softmax=True):
        self.num_classes = num_classes
        self.fuse_softmax = fuse_softmax
        # Persistent state kept lane-dense: pad C once to a multiple of 128 so
        # every store is an unmasked full-lane vst (padded lanes stay 0).
        self.padded_classes = ((num_classes + LANE - 1) // LANE) * LANE
        self.queue = jnp.zeros((DA_LEN, self.padded_classes), dtype=jnp.float32)
        self.ptr = jnp.zeros((1,), dtype=jnp.int32)   # mod-32 counter

    def __call__(self, x):
        B, C = x.shape
        assert C == self.num_classes
        Cp = self.padded_classes
        if Cp != C:
            fill = -1e30 if self.fuse_softmax else 0.0
            x = jnp.pad(x, ((0, 0), (0, Cp - C)), constant_values=fill)
        out, self.queue, self.ptr = _da_step(
            x, self.queue, self.ptr,
            fuse_softmax=self.fuse_softmax, valid_c=self.num_classes)
        if Cp != C:
            out = out[:, :C]
        return out


def _ref_step(probs, queue, ptr):
    """Pure-JAX reference (mirrors the PyTorch module with exact divides)."""
    m = probs.mean(0)
    queue = queue.at[ptr].set(m)
    new_ptr = (ptr + 1) % DA_LEN
    p = probs / queue.mean(0)
    p = p / p.sum(axis=1, keepdims=True)
    return p, queue, new_ptr


if __name__ == "__main__":
    k0, k1 = jax.random.split(jax.random.PRNGKey(0))

    # ---- Main config: lane-dense class dim (C = 128), fused softmax ----
    num_classes, batch = 128, 8
    logits = jax.random.normal(k0, (batch, num_classes), dtype=jnp.float32)
    probs = jax.nn.softmax(logits, axis=1)

    da = DAPallas(num_classes, fuse_softmax=True)
    out1 = da(logits)          # step 1: queue all zeros, ptr = 0
    out2 = da(logits)          # step 2: exercises ptr advance + live queue
    jax.block_until_ready(out2)

    ref_q = jnp.zeros((DA_LEN, num_classes), jnp.float32)
    ref_ptr = 0
    ref_out = None
    for _ in range(2):
        ref_out, ref_q, ref_ptr = _ref_step(probs, ref_q, ref_ptr)

    assert jnp.allclose(out2, ref_out, rtol=1e-3, atol=1e-6), "probs mismatch vs reference"
    assert jnp.allclose(da.queue, ref_q, rtol=1e-4, atol=1e-6), "queue mismatch vs reference"
    assert int(da.ptr[0]) == int(ref_ptr), "ptr mismatch vs reference"
    assert jnp.allclose(out2.sum(axis=1), 1.0, atol=1e-4), "rows do not sum to 1"

    # ---- Module-exact interface: probabilities in, no fused softmax ----
    da_p = DAPallas(num_classes, fuse_softmax=False)
    outp = da_p(probs)
    jax.block_until_ready(outp)
    ref_p, _, _ = _ref_step(probs, jnp.zeros((DA_LEN, num_classes), jnp.float32), 0)
    assert jnp.allclose(outp, ref_p, rtol=1e-3, atol=1e-6), "probs-interface mismatch"

    # ---- Non-multiple-of-128 class count: persistent-padding path ----
    num_classes2, batch2 = 10, 8
    logits2 = jax.random.normal(k1, (batch2, num_classes2), dtype=jnp.float32)
    da2 = DAPallas(num_classes2, fuse_softmax=True)
    out_a = da2(logits2)
    out_b = da2(logits2)
    jax.block_until_ready(out_b)

    probs2 = jax.nn.softmax(logits2, axis=1)
    ref_q2 = jnp.zeros((DA_LEN, num_classes2), jnp.float32)
    ref_ptr2 = 0
    ref_out2 = None
    for _ in range(2):
        ref_out2, ref_q2, ref_ptr2 = _ref_step(probs2, ref_q2, ref_ptr2)

    assert jnp.allclose(out_b, ref_out2, rtol=1e-3, atol=1e-6), "padded-path probs mismatch"
    assert jnp.allclose(da2.queue[:, :num_classes2], ref_q2, rtol=1e-4, atol=1e-6), \
        "padded-path queue mismatch"
    assert jnp.allclose(da2.queue[:, num_classes2:], 0.0), "padding lanes not zero"

    print("KERNEL_OK")
</pallas_src>

<mosaic_0001>
module attributes {stable_mosaic.version = 11 : i64} {
  func.func @_da_kernel(%arg0: memref<1xi32, #tpu.memory_space<smem>>, %arg1: memref<8x128xf32, #tpu.memory_space<vmem>>, %arg2: memref<32x128xf32, #tpu.memory_space<vmem>>, %arg3: memref<8x128xf32, #tpu.memory_space<vmem>>, %arg4: memref<32x128xf32, #tpu.memory_space<vmem>>, %arg5: memref<1xi32, #tpu.memory_space<smem>>) attributes {dimension_semantics = [], scalar_prefetch = 0 : i64, scratch_operands = 0 : i64, tpu.core_type = #tpu.core_type<tc>} {
    %c0 = arith.constant 0 : index
    %0 = memref.load %arg0[%c0] : memref<1xi32, #tpu.memory_space<smem>>
    %c0_0 = arith.constant 0 : index
    %c0_1 = arith.constant 0 : index
    %1 = vector.load %arg1[%c0_0, %c0_1] : memref<8x128xf32, #tpu.memory_space<vmem>>, vector<8x128xf32>
    %c0_2 = arith.constant 0 : index
    %c0_3 = arith.constant 0 : index
    %2 = vector.load %arg2[%c0_2, %c0_3] : memref<32x128xf32, #tpu.memory_space<vmem>>, vector<32x128xf32>
    %cst = arith.constant dense<0xFF800000> : vector<8xf32>
    %3 = vector.multi_reduction <maximumf>, %1, %cst [1] : vector<8x128xf32> to vector<8xf32>
    %4 = vector.shape_cast %3 : vector<8xf32> to vector<8x1xf32>
    %5 = vector.broadcast %4 : vector<8x1xf32> to vector<8x128xf32>
    %6 = arith.subf %1, %5 : vector<8x128xf32>
    %7 = math.exp %6 : vector<8x128xf32>
    %cst_4 = arith.constant dense<0.000000e+00> : vector<8xf32>
    %8 = vector.multi_reduction <add>, %7, %cst_4 [1] : vector<8x128xf32> to vector<8xf32>
    %9 = vector.shape_cast %8 : vector<8xf32> to vector<8x1xf32>
    %cst_5 = arith.constant 1.000000e+00 : f32
    %10 = vector.broadcast %cst_5 : f32 to vector<8x1xf32>
    %11 = arith.divf %10, %9 : vector<8x1xf32>
    %12 = vector.broadcast %11 : vector<8x1xf32> to vector<8x128xf32>
    %13 = arith.mulf %7, %12 : vector<8x128xf32>
    %cst_6 = arith.constant dense<0.000000e+00> : vector<128xf32>
    %14 = vector.multi_reduction <add>, %13, %cst_6 [0] : vector<8x128xf32> to vector<128xf32>
    %15 = vector.shape_cast %14 : vector<128xf32> to vector<1x128xf32>
    %cst_7 = arith.constant 8.000000e+00 : f32
    %16 = vector.broadcast %cst_7 : f32 to vector<1x128xf32>
    %17 = arith.divf %15, %16 : vector<1x128xf32>
    %18 = arith.index_cast %0 : i32 to index
    %c0_8 = arith.constant 0 : index
    %19 = vector.load %arg2[%18, %c0_8] : memref<32x128xf32, #tpu.memory_space<vmem>>, vector<1x128xf32>
    %cst_9 = arith.constant dense<0.000000e+00> : vector<128xf32>
    %20 = vector.multi_reduction <add>, %2, %cst_9 [0] : vector<32x128xf32> to vector<128xf32>
    %21 = vector.shape_cast %20 : vector<128xf32> to vector<1x128xf32>
    %22 = arith.subf %21, %19 : vector<1x128xf32>
    %23 = arith.addf %22, %17 : vector<1x128xf32>
    %cst_10 = arith.constant 3.125000e-02 : f32
    %24 = vector.broadcast %cst_10 : f32 to vector<1x128xf32>
    %25 = arith.mulf %23, %24 : vector<1x128xf32>
    %c0_11 = arith.constant 0 : index
    %c0_12 = arith.constant 0 : index
    %26 = vector.load %arg4[%c0_11, %c0_12] : memref<32x128xf32, #tpu.memory_space<vmem>>, vector<32x128xf32>
    tpu.vector_store %arg4[%c0_11, %c0_12], %2 {strides = array<i32>} : memref<32x128xf32, #tpu.memory_space<vmem>>, vector<32x128xf32>,
    %27 = arith.index_cast %0 : i32 to index
    %c0_13 = arith.constant 0 : index
    %28 = vector.load %arg4[%27, %c0_13] : memref<32x128xf32, #tpu.memory_space<vmem>>, vector<1x128xf32>
    tpu.vector_store %arg4[%27, %c0_13], %17 {strides = array<i32>} : memref<32x128xf32, #tpu.memory_space<vmem>>, vector<1x128xf32>,
    %cst_14 = arith.constant 1.000000e+00 : f32
    %29 = vector.broadcast %cst_14 : f32 to vector<1x128xf32>
    %30 = arith.divf %29, %25 : vector<1x128xf32>
    %31 = vector.broadcast %30 : vector<1x128xf32> to vector<8x128xf32>
    %32 = arith.mulf %13, %31 : vector<8x128xf32>
    %cst_15 = arith.constant dense<0.000000e+00> : vector<8xf32>
    %33 = vector.multi_reduction <add>, %32, %cst_15 [1] : vector<8x128xf32> to vector<8xf32>
    %34 = vector.shape_cast %33 : vector<8xf32> to vector<8x1xf32>
    %cst_16 = arith.constant 1.000000e+00 : f32
    %35 = vector.broadcast %cst_16 : f32 to vector<8x1xf32>
    %36 = arith.divf %35, %34 : vector<8x1xf32>
    %37 = vector.broadcast %36 : vector<8x1xf32> to vector<8x128xf32>
    %38 = arith.mulf %32, %37 : vector<8x128xf32>
    %c0_17 = arith.constant 0 : index
    %c0_18 = arith.constant 0 : index
    %39 = vector.load %arg3[%c0_17, %c0_18] : memref<8x128xf32, #tpu.memory_space<vmem>>, vector<8x128xf32>
    tpu.vector_store %arg3[%c0_17, %c0_18], %38 {strides = array<i32>} : memref<8x128xf32, #tpu.memory_space<vmem>>, vector<8x128xf32>,
    %c1_i32 = arith.constant 1 : i32
    %40 = arith.addi %0, %c1_i32 : i32
    %c32_i32 = arith.constant 32 : i32
    %c0_i32 = arith.constant 0 : i32
    %41 = arith.cmpi eq, %c32_i32, %c0_i32 : i32
    %c1_i32_19 = arith.constant 1 : i32
    %42 = arith.select %41, %c1_i32_19, %c32_i32 : i32
    %43 = arith.remsi %40, %42 : i32
    %c0_i32_20 = arith.constant 0 : i32
    %44 = arith.cmpi ne, %43, %c0_i32_20 : i32
    %c0_i32_21 = arith.constant 0 : i32
    %45 = arith.cmpi slt, %43, %c0_i32_21 : i32
    %c0_i32_22 = arith.constant 0 : i32
    %46 = arith.cmpi slt, %42, %c0_i32_22 : i32
    %47 = arith.xori %45, %46 : i1
    %48 = arith.andi %47, %44 : i1
    %49 = arith.addi %43, %42 : i32
    %50 = arith.select %48, %49, %43 : i32
    %c0_23 = arith.constant 0 : index
    %51 = memref.load %arg5[%c0_23] : memref<1xi32, #tpu.memory_space<smem>>
    memref.store %50, %arg5[%c0_23] : memref<1xi32, #tpu.memory_space<smem>>
    return
  }
}

</mosaic_0001>

<bundles_post_ra>
// kernel: _da_step.1
= control target key start
LH: loop header
LB: loop body
LE: loop exit
PB: predicated region body
PF: predicated region fallthrough
CT: control target
= control target key end

     0   :  { %12 = vsyncpa [#allocation4], 0  ;;  %s412_s0 = inlined_call_operand.<no memory space> [shape: s32[1], index: 0, kind: input, shape index: {}]   ;;  %s413_s1 = inlined_call_operand.hbm [shape: f32[8,128], index: 1, kind: input, shape index: {}]   ;;  %s414_s2 = inlined_call_operand.hbm [shape: f32[32,128], index: 2, kind: input, shape index: {}]   ;;  %s415_s3 = inlined_call_operand.hbm [shape: f32[8,128], index: 3, kind: output, shape index: {0}]   ;;  %s416_s4 = inlined_call_operand.hbm [shape: f32[32,128], index: 4, kind: output, shape index: {1}]   ;;  %s417_s5 = inlined_call_operand.hbm [shape: s32[1], index: 5, kind: output, shape index: {2}]  }
   0x1   :  { %13 = vsyncpa [#allocation8], 0 }
   0x2   :  { %14 = vsyncpa [#allocation5], 0 }
   0x3   :  { %15 = vsyncpa [#allocation11], 0 }
   0x4   :  { %16 = vsyncpa [#allocation6], 0  ;;  %s292_s18 = smov [#allocation3]   ;;  %s293_s20 = smov [#allocation7]  }
   0x5   :  { %s25_s19 = sshll.u32 %s292_s18, 4  ;;  %s34_s21 = sshll.u32 %s293_s20, 4  ;;  %s26_s19 = int_to_ptr.vmem [resolvable:$true] %s25_s19  ;;  %s329_s21 = int_to_ptr.vmem [resolvable:$true] %s34_s21 }
   0x6   :  { %s184_s24 = scalar_lea.hbm %s413_s1, 128 }
   0x7   :  { %p185_p0 = scmp.ne.s32.totalorder %s413_s1, %s184_s24  ;;  %p188_p1 = scmp.lt.u32.totalorder %s184_s24, %s413_s1 }
   0x9   :  { %p190_p2 = pnand %p188_p1, %p185_p0 }
   0xb   :  { %193 = shalt.err (!%p190_p2)
}
   0xc   :  { %s194_s29 = scalar_lea.vmem %s26_s19, 128  ;;  %p199_p4 = scmp.lt.s32.totalorder %s26_s19, %s26_s19 }
   0xd   :  { %p195_p3 = scmp.ne.s32.totalorder %s26_s19, %s194_s29  ;;  %p200_p5 = scmp.lt.s32.totalorder %s194_s29, %s194_s29 }
   0xf   :  { %p201_p6 = por %p200_p5, %p199_p4 }
  0x11   :  { %p202_p7 = pnand %p201_p6, %p195_p3 }
  0x13   :  { %205 = shalt.err (!%p202_p7)
}
  0x14   :  { %28 = dma.hbm_to_vmem [thread:$0]  %s413_s1, 128, %s26_s19, [#allocation4]  }
  0x15   :  { %s206_s9 = scalar_lea.hbm %s414_s2, 512 }
  0x16   :  { %p207_p8 = scmp.ne.s32.totalorder %s414_s2, %s206_s9  ;;  %p210_p9 = scmp.lt.u32.totalorder %s206_s9, %s414_s2 }
  0x18   :  { %p212_p10 = pnand %p210_p9, %p207_p8 }
  0x1a   :  { %215 = shalt.err (!%p212_p10)
}
  0x1b   :  { %s216_s14 = scalar_lea.vmem %s329_s21, 512  ;;  %p221_p12 = scmp.lt.s32.totalorder %s329_s21, %s329_s21 }
  0x1c   :  { %p217_p11 = scmp.ne.s32.totalorder %s329_s21, %s216_s14  ;;  %p222_p13 = scmp.lt.s32.totalorder %s216_s14, %s216_s14 }
  0x1e   :  { %p223_p0 = por %p222_p13, %p221_p12 }
  0x20   :  { %p224_p1 = pnand %p223_p0, %p217_p11 }
  0x22   :  { %227 = shalt.err (!%p224_p1)
}
  0x23   :  { %s294_s1 = smov 128   ;;  %s295_s15 = smov 8  }
  0x24   :  { %40 = dma.hbm_to_vmem [thread:$0]  %s414_s2, 512, %s329_s21, [#allocation8], %s294_s1, %s294_s1, %s295_s15  }
  0x25   :  { %282 = dma.done.wait [#allocation4], 128  }
  0x26   :  { %283 = vsyncadd [#allocation4], 4294967168 }
  0x27   :  { %284 = dma.done.wait [#allocation8], 512  }
  0x28   :  { %285 = vsyncadd [#allocation8], 4294966784  ;;  %v48_v0 = vld [vmem:[#allocation3] sm:$0xff]  ;;  %v49_v5 = vld [vmem:[#allocation7] sm:$0xff]  ;;  %s71_s19 = scalar_lea.vmem [#allocation7], %s412_s0  ;;  %s89_s22 = scalar_lea.vmem [#allocation10], %s412_s0  ;;  %v93_v32 = vlaneseq }
  0x29   :  { %53 = vmax.xlane.f32.xlu0 %v48_v0  ;;  %v50_v6 = vld [vmem:[#allocation7 + $0x8] sm:$0xff]  ;;  %v51_v7 = vld [vmem:[#allocation7 + $0x10] sm:$0xff]  ;;  %v52_v8 = vld [vmem:[#allocation7 + $0x18] sm:$0xff]  ;;  %85 = vst [vmem:[#allocation10] sm:$0xff] %v49_v5  ;;  %s104_s25 = sadd.s32 1, %s412_s0  ;;  %s296_s30 = smov [#allocation10]  }
  0x2a   :  { %86 = vst [vmem:[#allocation10 + $0x8] sm:$0xff] %v50_v6  ;;  %87 = vst [vmem:[#allocation10 + $0x10] sm:$0xff] %v51_v7  ;;  %v73_v9 = vadd.f32 %v50_v6, %v49_v5  ;;  %v72_v25 = vld [vmem:[%s71_s19] sm:$0x1]  ;;  %v94_v33 = vshrl.u32 %v93_v32, 7  ;;  %s106_s26 = ssub.s32 0, %s104_s25 }
  0x2b   :  { %88 = vst [vmem:[#allocation10 + $0x18] sm:$0xff] %v52_v8  ;;  %s166_s27 = smin.u32 %s106_s26, %s104_s25  ;;  %p105_p2 = scmp.lt.s32.totalorder %s104_s25, 0 }
  0x2c   :  { %v74_v10 = vadd.f32 %v73_v9, %v51_v7  ;;  %v95_v34 = vsub.s32 0, %v94_v33  ;;  %s108_s28 = sand.u32 31, %s166_s27   ;;  %s134_s6 = sshll.u32 %s296_s30, 4  ;;  %s135_s6 = int_to_ptr.vmem [resolvable:$true] %s134_s6 }
  0x2d   :  { %s109_s29 = ssub.s32 0, %s108_s28  ;;  %s228_s8 = scalar_lea.vmem %s135_s6, 512 }
  0x2e   :  { %v75_v11 = vadd.f32 %v74_v10, %v52_v8  ;;  %s419_s29 = smov (!%p105_p2, %s109_s29), %s108_s28  ;;  %p229_p4 = scmp.ne.s32.totalorder %s135_s6, %s228_s8 }
  0x2f   :  { %p168_p3 = scmp.lt.s32.totalorder %s419_s29, 0  ;;  %s115_s7 = sadd.s32 32, %s419_s29 }
  0x30   :  { %v76_v13 = vrot.slane %v75_v11, 4  ;;  %p233_p5 = scmp.lt.s32.totalorder %s135_s6, %s135_s6  ;;  %p234_p6 = scmp.lt.s32.totalorder %s228_s8, %s228_s8 }
  0x32   :  { %v77_v14 = vadd.f32 %v76_v13, %v75_v11  ;;  %p235_p7 = por %p234_p6, %p233_p5 }
  0x34   :  { %v78_v15 = vrot.slane %v77_v14, 2  ;;  %p236_p8 = pnand %p235_p7, %p229_p4 }
  0x36   :  { %v79_v18 = vadd.f32 %v78_v15, %v77_v14 }
  0x38   :  { %v80_v21 = vrot.slane %v79_v18, 1 }
  0x3a   :  { %v81_v24 = vadd.f32 %v80_v21, %v79_v18 }
  0x3c   :  { %v82_v28 = vsub.f32 %v81_v24, %v72_v25 }
  0xb6   :  { %v54_v1 = vpop.xlane.xlu0 %53 }
  0xb7   :  { %v55_v2 = vsub.f32 %v48_v0, %v54_v1 }
  0xb9   :  { %v56_v3 = vmul.f32 1.442695, %v55_v2 }
  0xbb   :  { %176 = vpow2.f32 %v56_v3 }
  0xc5   :  { %v177_v4 = vpop.eup %176 }
  0xc6   :  { %58 = vadd.xlane.f32.xlu0 %v177_v4 }
 0x153   :  { %v59_v12 = vpop.xlane.xlu0 %58 }
 0x154   :  { %178 = vrcp.f32 %v59_v12 }
 0x15e   :  { %v179_v16 = vpop.eup %178 }
 0x15f   :  { %v62_v17 = vmul.f32 %v179_v16, %v177_v4 }
 0x161   :  { %v63_v19 = vrot.slane %v62_v17, 4 }
 0x163   :  { %v64_v20 = vadd.f32 %v63_v19, %v62_v17 }
 0x165   :  { %v65_v22 = vrot.slane %v64_v20, 2 }
 0x167   :  { %v66_v23 = vadd.f32 %v65_v22, %v64_v20 }
 0x169   :  { %v67_v26 = vrot.slane %v66_v23, 1 }
 0x16b   :  { %v68_v27 = vadd.f32 %v67_v26, %v66_v23 }
 0x16d   :  { %v70_v29 = vmul.f32 0.125, %v68_v27 }
 0x16f   :  { %v83_v30 = vadd.f32 %v82_v28, %v70_v29  ;;  %90 = vst [vmem:[%s89_s22] sm:$0x1] %v70_v29 }
 0x171   :  { %v84_v31 = vmul.f32 0.03125, %v83_v30 }
 0x173   :  { %180 = vrcp.f32 %v84_v31 }
 0x17d   :  { %v181_v35 = vpop.eup %180 }
 0x17e   :  { %v96_v36 = vrot.slane %v181_v35, %v95_v34 }
 0x180   :  { %v97_v37 = vmul.f32 %v96_v36, %v62_v17 }
 0x182   :  { %98 = vadd.xlane.f32.xlu1 %v97_v37 }
 0x183   :  { %239 = shalt.err (!%p236_p8)
}
 0x184   :  { %s240_s10 = scalar_lea.hbm %s416_s4, 512 }
 0x185   :  { %p241_p9 = scmp.ne.s32.totalorder %s416_s4, %s240_s10  ;;  %p244_p10 = scmp.lt.u32.totalorder %s240_s10, %s416_s4 }
 0x187   :  { %p246_p11 = pnand %p244_p10, %p241_p9 }
 0x189   :  { %249 = shalt.err (!%p246_p11)
}
 0x18a   :  { %140 = dma.vmem_to_hbm [thread:$0]  %s135_s6, 512, %s416_s4, [#allocation11], %s294_s1, %s294_s1, %s295_s15  }
 0x18b   :  { %s421_s7 = smov (!%p168_p3, %s115_s7), %s419_s29  ;;  %s250_s19 = scalar_lea.hbm %s417_s5, 16 }
 0x18c   :  { %118 = sst [smem:[#allocation12]] %s421_s7  ;;  %p251_p12 = scmp.ne.s32.totalorder %s417_s5, %s250_s19 }
 0x18d   :  { %p254_p13 = scmp.lt.u32.totalorder %s250_s19, %s417_s5 }
 0x18f   :  { %p256_p0 = pnand %p254_p13, %p251_p12 }
 0x191   :  { %259 = shalt.err (!%p256_p0)
}
 0x192   :  { %s297_s24 = smov [#allocation12]   ;;  %s298_s1 = smov [#allocation9]  }
 0x193   :  { %148 = dma.smem_to_hbm %s297_s24, 16, %s417_s5, [#allocation6]  }
 0x194   :  { %s125_s15 = sshll.u32 %s298_s1, 4  ;;  %s126_s15 = int_to_ptr.vmem [resolvable:$true] %s125_s15 }
 0x195   :  { %s260_s26 = scalar_lea.vmem %s126_s15, 128  ;;  %p265_p2 = scmp.lt.s32.totalorder %s126_s15, %s126_s15 }
 0x196   :  { %p261_p1 = scmp.ne.s32.totalorder %s126_s15, %s260_s26  ;;  %p266_p3 = scmp.lt.s32.totalorder %s260_s26, %s260_s26 }
 0x198   :  { %p267_p4 = por %p266_p3, %p265_p2 }
 0x19a   :  { %p268_p5 = pnand %p267_p4, %p261_p1 }
 0x20f   :  { %v99_v38 = vpop.xlane.xlu1 %98 }
 0x210   :  { %182 = vrcp.f32 %v99_v38 }
 0x21a   :  { %v183_v39 = vpop.eup %182 }
 0x21b   :  { %v102_v40 = vmul.f32 %v183_v39, %v97_v37 }
 0x21d   :  { %103 = vst [vmem:[#allocation9] sm:$0xff] %v102_v40 }
 0x21e   :  { %271 = shalt.err (!%p268_p5)
}
 0x21f   :  { %s272_s29 = scalar_lea.hbm %s415_s3, 128 }
 0x220   :  { %p273_p6 = scmp.ne.s32.totalorder %s415_s3, %s272_s29  ;;  %p276_p7 = scmp.lt.u32.totalorder %s272_s29, %s415_s3 }
 0x222   :  { %p278_p8 = pnand %p276_p7, %p273_p6 }
 0x224   :  { %281 = shalt.err (!%p278_p8)
}
 0x225   :  { %128 = dma.vmem_to_hbm [thread:$0]  %s126_s15, 128, %s415_s3, [#allocation5]  }
 0x226   :  { %286 = dma.done.wait [#allocation5], 128  }
 0x227   :  { %287 = vsyncadd [#allocation5], 4294967168 }
 0x228   :  { %288 = dma.done.wait [#allocation11], 512  }
 0x229   :  { %289 = vsyncadd [#allocation11], 4294966784 }
 0x22a   :  { %290 = dma.done.wait [#allocation6], 16  }
 0x22b   :  { %291 = vsyncadd [#allocation6], 4294967280 }
 0x22c   :  { %158 = sfence }
 0x22d   :  { %159 = vsyncpa [#allocation4], 1 }
 0x22e   :  { %160 = vsyncpa [#allocation8], 1 }
 0x22f   :  { %161 = vsyncpa [#allocation5], 1 }
 0x230   :  { %162 = vsyncpa [#allocation11], 1 }
 0x231   :  { %163 = vsyncpa [#allocation6], 1 }

</bundles_post_ra>
